<compile_context>
chip_gen: v7x
topology: tpu7x:2x2x1
jax: 0.10.0
libtpu: 0.0.40
codegen_flags: <defaults>
</compile_context>

<pallas_src>
import jax
import jax.numpy as jnp
from jax import lax
from jax.experimental import pallas as pl
from jax.experimental.pallas import tpu as pltpu

NUM_CHANNELS = 5  # fixed by BoundaryLoss.compute_boundaries


def _choose_row_tile(H, W, C, budget_bytes):
    """Row tile TH: the full H if it fits the budget, otherwise the largest
    multiple-of-8 divisor of H whose (C, TH, W) f32 block fits."""
    bytes_per_row = C * W * 4
    max_rows = max(8, min(512, budget_bytes // bytes_per_row))
    if H <= max_rows:
        return H
    th = None
    r = 8
    while r <= max_rows:
        if H % r == 0:
            th = r
        r += 8
    return th if th is not None else H


def _make_boundary_kernel(H, W, TH, NT, ACC_ROWS):
    def kernel(inp_ref, tgt_ref, out_ref, edges_ref):
        # inp_ref:   (C, TH, W)       f32   row tile of the predictions
        # tgt_ref:   (H, W)           int8  full mask, resident across row tiles
        # out_ref:   (ACC_ROWS, W)    f32   per-batch partial sums (resident)
        # edges_ref: (H, W)           f32   VMEM scratch: Sobel magnitude
        t = pl.program_id(1)

        @pl.when(t == 0)
        def _per_batch_init():
            m = tgt_ref[...].astype(jnp.float32)                     # (H, W)
            row = lax.broadcasted_iota(jnp.int32, (H, W), 0)
            col = lax.broadcasted_iota(jnp.int32, (H, W), 1)

            # Vertical neighbours (sublane rolls, XLU) with zero padding.
            m_im1 = jnp.where(row == 0, 0.0,
                              pltpu.roll(m, shift=1, axis=0))        # m[i-1, j]
            m_ip1 = jnp.where(row == H - 1, 0.0,
                              pltpu.roll(m, shift=H - 1, axis=0))    # m[i+1, j]

            s = m_im1 + 2.0 * m + m_ip1          # vertical smooth [1, 2, 1]
            d = m_ip1 - m_im1                    # vertical diff   [-1, 0, 1]

            # Horizontal neighbours (lane rolls, XLU) with zero padding.
            s_jm1 = jnp.where(col == 0, 0.0, pltpu.roll(s, shift=1, axis=1))
            s_jp1 = jnp.where(col == W - 1, 0.0, pltpu.roll(s, shift=W - 1, axis=1))
            d_jm1 = jnp.where(col == 0, 0.0, pltpu.roll(d, shift=1, axis=1))
            d_jp1 = jnp.where(col == W - 1, 0.0, pltpu.roll(d, shift=W - 1, axis=1))

            ex = s_jp1 - s_jm1                   # == conv2d(m, sobel_x, pad=1)
            ey = d_jm1 + 2.0 * d + d_jp1         # == conv2d(m, sobel_y, pad=1)
            edges_ref[...] = jnp.sqrt(ex * ex + ey * ey)

            out_ref[...] = jnp.zeros_like(out_ref)

        # ---- L1 contribution of this (batch, row-tile) ----
        if NT == 1:
            e_tile = edges_ref[...]
        else:
            r0 = pl.multiple_of(t * TH, 8)
            e_tile = edges_ref[pl.ds(r0, TH), :]                     # aligned slice

        diff = jnp.abs(inp_ref[...] - e_tile[None, :, :])            # (C, TH, W)
        r = jnp.sum(diff, axis=0)                                    # (TH, W) VPU
        if ACC_ROWS == 8:
            part = r[0:8, :]
            for g in range(1, TH // 8):                              # static unroll
                part = part + r[g * 8:(g + 1) * 8, :]                # (8, W) VPU
        else:
            part = jnp.sum(r, axis=0, keepdims=True)                 # (1, W)
        out_ref[...] += part

    return kernel


def boundary_loss(inputs, targets, *, row_tile_budget_bytes=8 * 1024 * 1024):
    """inputs: (B, 5, H, W) float; targets: (B, H, W) integer class mask."""
    B, C, H, W = inputs.shape
    assert C == NUM_CHANNELS
    assert targets.shape == (B, H, W)

    inputs = inputs.astype(jnp.float32)
    # Class ids are tiny (0..4): ship them as int8 to cut HBM traffic.
    tgt8 = targets.astype(jnp.int8)

    TH = _choose_row_tile(H, W, C, row_tile_budget_bytes)
    assert H % TH == 0
    NT = H // TH
    ACC_ROWS = 8 if TH % 8 == 0 else 1

    kernel = _make_boundary_kernel(H, W, TH, NT, ACC_ROWS)

    partials = pl.pallas_call(
        kernel,
        out_shape=jax.ShapeDtypeStruct((B, ACC_ROWS, W), jnp.float32),
        grid_spec=pltpu.PrefetchScalarGridSpec(
            num_scalar_prefetch=0,
            grid=(B, NT),
            in_specs=[
                # Big operand: row-tiled.
                pl.BlockSpec((None, C, TH, W), lambda b, t: (b, 0, t, 0)),
                # Mask: full image per batch, resident across the row-tile axis.
                pl.BlockSpec((None, H, W), lambda b, t: (b, 0, 0)),
            ],
            out_specs=pl.BlockSpec((None, ACC_ROWS, W), lambda b, t: (b, 0, 0)),
            scratch_shapes=[pltpu.VMEM((H, W), jnp.float32)],
        ),
        compiler_params=pltpu.CompilerParams(
            dimension_semantics=("parallel", "arbitrary"),
            vmem_limit_bytes=48 * 1024 * 1024,
        ),
    )(inputs, tgt8)

    # F.l1_loss default reduction='mean'
    return (jnp.sum(partials) / jnp.float32(B * C * H * W)).astype(jnp.float32)


def _reference_boundary_loss(inputs, targets):
    """Pure-JAX reference using lax conv (cross-correlation, like F.conv2d)."""
    B, C, H, W = inputs.shape
    m = targets.astype(jnp.float32)[:, None, :, :]                   # (B,1,H,W)
    sobel_x = jnp.array([[-1, 0, 1], [-2, 0, 2], [-1, 0, 1]],
                        dtype=jnp.float32).reshape(1, 1, 3, 3)
    sobel_y = jnp.array([[-1, -2, -1], [0, 0, 0], [1, 2, 1]],
                        dtype=jnp.float32).reshape(1, 1, 3, 3)
    dn = ("NCHW", "OIHW", "NCHW")
    ex = lax.conv_general_dilated(m, sobel_x, (1, 1), "SAME", dimension_numbers=dn)
    ey = lax.conv_general_dilated(m, sobel_y, (1, 1), "SAME", dimension_numbers=dn)
    edges = jnp.sqrt(ex * ex + ey * ey)                              # (B,1,H,W)
    boundary_maps = jnp.broadcast_to(edges, (B, C, H, W))
    return jnp.mean(jnp.abs(inputs.astype(jnp.float32) - boundary_maps))


if __name__ == "__main__":
    key = jax.random.PRNGKey(0)
    k1, k2, k3, k4 = jax.random.split(key, 4)

    # Case 1: small shapes consistent with the module (single row tile, NT=1).
    B, C, H, W = 2, NUM_CHANNELS, 16, 16
    inputs = jax.random.normal(k1, (B, C, H, W), dtype=jnp.float32)
    targets = jax.random.randint(k2, (B, H, W), 0, NUM_CHANNELS, dtype=jnp.int32)
    loss = boundary_loss(inputs, targets)
    jax.block_until_ready(loss)
    ref = _reference_boundary_loss(inputs, targets)
    assert jnp.allclose(loss, ref, rtol=1e-5, atol=1e-5), (loss, ref)

    # Case 2: exercises the row-tiled accumulation path (TH=8, 4 tiles, W=128).
    B2, H2, W2 = 2, 32, 128
    inputs2 = jax.random.normal(k3, (B2, NUM_CHANNELS, H2, W2), dtype=jnp.float32)
    targets2 = jax.random.randint(k4, (B2, H2, W2), 0, NUM_CHANNELS, dtype=jnp.int32)
    loss2 = boundary_loss(inputs2, targets2,
                          row_tile_budget_bytes=NUM_CHANNELS * W2 * 4 * 8)
    jax.block_until_ready(loss2)
    ref2 = _reference_boundary_loss(inputs2, targets2)
    assert jnp.allclose(loss2, ref2, rtol=1e-5, atol=1e-5), (loss2, ref2)

    print("KERNEL_OK")
</pallas_src>

<mosaic_0001>
module attributes {stable_mosaic.version = 11 : i64} {
  func.func @kernel(%arg0: i32, %arg1: i32, %arg2: memref<1x5x16x16xf32, #tpu.memory_space<vmem>>, %arg3: memref<1x16x16xi8, #tpu.memory_space<vmem>>, %arg4: memref<1x8x16xf32, #tpu.memory_space<vmem>>, %arg5: memref<16x16xf32, #tpu.memory_space<vmem>>) attributes {dimension_semantics = [#tpu.dimension_semantics<parallel>, #tpu.dimension_semantics<arbitrary>], iteration_bounds = array<i64: 2, 1>, scalar_prefetch = 0 : i64, scratch_operands = 1 : i64, tpu.core_type = #tpu.core_type<tc>, window_params = [{transform_indices = @transform_0, window_bounds = array<i64: 1, 5, 16, 16>}, {transform_indices = @transform_1, window_bounds = array<i64: 1, 16, 16>}, {transform_indices = @transform_2, window_bounds = array<i64: 1, 8, 16>}]} {
    %c0_i32 = arith.constant 0 : i32
    %0 = arith.cmpi eq, %arg1, %c0_i32 : i32
    %1 = arith.extui %0 : i1 to i32
    %c0_i32_0 = arith.constant 0 : i32
    %2 = arith.cmpi ne, %1, %c0_i32_0 : i32
    scf.if %2 {
      %c0_12 = arith.constant 0 : index
      %c0_13 = arith.constant 0 : index
      %c0_14 = arith.constant 0 : index
      %20 = vector.load %arg3[%c0_12, %c0_13, %c0_14] : memref<1x16x16xi8, #tpu.memory_space<vmem>>, vector<1x16x16xi8>
      %21 = vector.shape_cast %20 : vector<1x16x16xi8> to vector<16x16xi8>
      %22 = arith.sitofp %21 : vector<16x16xi8> to vector<16x16xf32>
      %23 = tpu.iota {dimensions = array<i32: 0>} : vector<16x16xi32>
      %24 = tpu.iota {dimensions = array<i32: 1>} : vector<16x16xi32>
      %c0_i32_15 = arith.constant 0 : i32
      %25 = vector.broadcast %c0_i32_15 : i32 to vector<16x16xi32>
      %26 = arith.cmpi eq, %23, %25 : vector<16x16xi32>
      %c1_i32 = arith.constant 1 : i32
      %27 = tpu.dynamic_rotate %22 by %c1_i32 dim 0 : vector<16x16xf32>, i32 -> vector<16x16xf32>
      %cst_16 = arith.constant 0.000000e+00 : f32
      %28 = vector.broadcast %cst_16 : f32 to vector<16x16xf32>
      %29 = arith.select %26, %28, %27 : vector<16x16xi1>, vector<16x16xf32>
      %c15_i32 = arith.constant 15 : i32
      %30 = vector.broadcast %c15_i32 : i32 to vector<16x16xi32>
      %31 = arith.cmpi eq, %23, %30 : vector<16x16xi32>
      %c15_i32_17 = arith.constant 15 : i32
      %32 = tpu.dynamic_rotate %22 by %c15_i32_17 dim 0 : vector<16x16xf32>, i32 -> vector<16x16xf32>
      %cst_18 = arith.constant 0.000000e+00 : f32
      %33 = vector.broadcast %cst_18 : f32 to vector<16x16xf32>
      %34 = arith.select %31, %33, %32 : vector<16x16xi1>, vector<16x16xf32>
      %cst_19 = arith.constant 2.000000e+00 : f32
      %35 = vector.broadcast %cst_19 : f32 to vector<16x16xf32>
      %36 = arith.mulf %35, %22 : vector<16x16xf32>
      %37 = arith.addf %29, %36 : vector<16x16xf32>
      %38 = arith.addf %37, %34 : vector<16x16xf32>
      %39 = arith.subf %34, %29 : vector<16x16xf32>
      %c0_i32_20 = arith.constant 0 : i32
      %40 = vector.broadcast %c0_i32_20 : i32 to vector<16x16xi32>
      %41 = arith.cmpi eq, %24, %40 : vector<16x16xi32>
      %c1_i32_21 = arith.constant 1 : i32
      %42 = tpu.dynamic_rotate %38 by %c1_i32_21 dim 1 : vector<16x16xf32>, i32 -> vector<16x16xf32>
      %cst_22 = arith.constant 0.000000e+00 : f32
      %43 = vector.broadcast %cst_22 : f32 to vector<16x16xf32>
      %44 = arith.select %41, %43, %42 : vector<16x16xi1>, vector<16x16xf32>
      %c15_i32_23 = arith.constant 15 : i32
      %45 = vector.broadcast %c15_i32_23 : i32 to vector<16x16xi32>
      %46 = arith.cmpi eq, %24, %45 : vector<16x16xi32>
      %c15_i32_24 = arith.constant 15 : i32
      %47 = tpu.dynamic_rotate %38 by %c15_i32_24 dim 1 : vector<16x16xf32>, i32 -> vector<16x16xf32>
      %cst_25 = arith.constant 0.000000e+00 : f32
      %48 = vector.broadcast %cst_25 : f32 to vector<16x16xf32>
      %49 = arith.select %46, %48, %47 : vector<16x16xi1>, vector<16x16xf32>
      %c0_i32_26 = arith.constant 0 : i32
      %50 = vector.broadcast %c0_i32_26 : i32 to vector<16x16xi32>
      %51 = arith.cmpi eq, %24, %50 : vector<16x16xi32>
      %c1_i32_27 = arith.constant 1 : i32
      %52 = tpu.dynamic_rotate %39 by %c1_i32_27 dim 1 : vector<16x16xf32>, i32 -> vector<16x16xf32>
      %cst_28 = arith.constant 0.000000e+00 : f32
      %53 = vector.broadcast %cst_28 : f32 to vector<16x16xf32>
      %54 = arith.select %51, %53, %52 : vector<16x16xi1>, vector<16x16xf32>
      %c15_i32_29 = arith.constant 15 : i32
      %55 = vector.broadcast %c15_i32_29 : i32 to vector<16x16xi32>
      %56 = arith.cmpi eq, %24, %55 : vector<16x16xi32>
      %c15_i32_30 = arith.constant 15 : i32
      %57 = tpu.dynamic_rotate %39 by %c15_i32_30 dim 1 : vector<16x16xf32>, i32 -> vector<16x16xf32>
      %cst_31 = arith.constant 0.000000e+00 : f32
      %58 = vector.broadcast %cst_31 : f32 to vector<16x16xf32>
      %59 = arith.select %56, %58, %57 : vector<16x16xi1>, vector<16x16xf32>
      %60 = arith.subf %49, %44 : vector<16x16xf32>
      %cst_32 = arith.constant 2.000000e+00 : f32
      %61 = vector.broadcast %cst_32 : f32 to vector<16x16xf32>
      %62 = arith.mulf %61, %39 : vector<16x16xf32>
      %63 = arith.addf %54, %62 : vector<16x16xf32>
      %64 = arith.addf %63, %59 : vector<16x16xf32>
      %65 = arith.mulf %60, %60 : vector<16x16xf32>
      %66 = arith.mulf %64, %64 : vector<16x16xf32>
      %67 = arith.addf %65, %66 : vector<16x16xf32>
      %68 = math.sqrt %67 : vector<16x16xf32>
      %c0_33 = arith.constant 0 : index
      %c0_34 = arith.constant 0 : index
      %69 = vector.load %arg5[%c0_33, %c0_34] : memref<16x16xf32, #tpu.memory_space<vmem>>, vector<16x16xf32>
      tpu.vector_store %arg5[%c0_33, %c0_34], %68 {strides = array<i32>} : memref<16x16xf32, #tpu.memory_space<vmem>>, vector<16x16xf32>,
      %cst_35 = arith.constant 0.000000e+00 : f32
      %70 = vector.broadcast %cst_35 : f32 to vector<8x16xf32>
      %c0_36 = arith.constant 0 : index
      %c0_37 = arith.constant 0 : index
      %c0_38 = arith.constant 0 : index
      %71 = vector.load %arg4[%c0_36, %c0_37, %c0_38] : memref<1x8x16xf32, #tpu.memory_space<vmem>>, vector<1x8x16xf32>
      %72 = vector.shape_cast %71 : vector<1x8x16xf32> to vector<8x16xf32>
      %73 = vector.shape_cast %70 : vector<8x16xf32> to vector<1x8x16xf32>
      tpu.vector_store %arg4[%c0_36, %c0_37, %c0_38], %73 {strides = array<i32>} : memref<1x8x16xf32, #tpu.memory_space<vmem>>, vector<1x8x16xf32>,
    } else {
    }
    %c0 = arith.constant 0 : index
    %c0_1 = arith.constant 0 : index
    %3 = vector.load %arg5[%c0, %c0_1] : memref<16x16xf32, #tpu.memory_space<vmem>>, vector<16x16xf32>
    %c0_2 = arith.constant 0 : index
    %c0_3 = arith.constant 0 : index
    %c0_4 = arith.constant 0 : index
    %c0_5 = arith.constant 0 : index
    %4 = vector.load %arg2[%c0_2, %c0_3, %c0_4, %c0_5] : memref<1x5x16x16xf32, #tpu.memory_space<vmem>>, vector<1x5x16x16xf32>
    %5 = vector.shape_cast %4 : vector<1x5x16x16xf32> to vector<5x16x16xf32>
    %6 = vector.shape_cast %3 : vector<16x16xf32> to vector<1x16x16xf32>
    %7 = vector.broadcast %6 : vector<1x16x16xf32> to vector<5x16x16xf32>
    %8 = arith.subf %5, %7 : vector<5x16x16xf32>
    %9 = math.absf %8 : vector<5x16x16xf32>
    %cst = arith.constant dense<0.000000e+00> : vector<16x16xf32>
    %10 = vector.multi_reduction <add>, %9, %cst [0] : vector<5x16x16xf32> to vector<16x16xf32>
    %11 = vector.extract_strided_slice %10 {offsets = [0, 0], sizes = [8, 16], strides = [1, 1]} : vector<16x16xf32> to vector<8x16xf32>
    %12 = vector.extract_strided_slice %10 {offsets = [8, 0], sizes = [8, 16], strides = [1, 1]} : vector<16x16xf32> to vector<8x16xf32>
    %13 = arith.addf %11, %12 : vector<8x16xf32>
    %c0_6 = arith.constant 0 : index
    %c0_7 = arith.constant 0 : index
    %c0_8 = arith.constant 0 : index
    %14 = vector.load %arg4[%c0_6, %c0_7, %c0_8] : memref<1x8x16xf32, #tpu.memory_space<vmem>>, vector<1x8x16xf32>
    %15 = vector.shape_cast %14 : vector<1x8x16xf32> to vector<8x16xf32>
    %16 = arith.addf %15, %13 : vector<8x16xf32>
    %c0_9 = arith.constant 0 : index
    %c0_10 = arith.constant 0 : index
    %c0_11 = arith.constant 0 : index
    %17 = vector.load %arg4[%c0_9, %c0_10, %c0_11] : memref<1x8x16xf32, #tpu.memory_space<vmem>>, vector<1x8x16xf32>
    %18 = vector.shape_cast %17 : vector<1x8x16xf32> to vector<8x16xf32>
    %19 = vector.shape_cast %16 : vector<8x16xf32> to vector<1x8x16xf32>
    tpu.vector_store %arg4[%c0_9, %c0_10, %c0_11], %19 {strides = array<i32>} : memref<1x8x16xf32, #tpu.memory_space<vmem>>, vector<1x8x16xf32>,
    return
  }
  func.func @transform_0(%arg0: i32, %arg1: i32) -> (i32, i32, i32, i32) {
    %c0_i32 = arith.constant 0 : i32
    %c0_i32_0 = arith.constant 0 : i32
    %c0_i32_1 = arith.constant 0 : i32
    return %arg0, %c0_i32, %arg1, %c0_i32_0 : i32, i32, i32, i32
  }
  func.func @transform_1(%arg0: i32, %arg1: i32) -> (i32, i32, i32) {
    %c0_i32 = arith.constant 0 : i32
    %c0_i32_0 = arith.constant 0 : i32
    %c0_i32_1 = arith.constant 0 : i32
    return %arg0, %c0_i32, %c0_i32_0 : i32, i32, i32
  }
  func.func @transform_2(%arg0: i32, %arg1: i32) -> (i32, i32, i32) {
    %c0_i32 = arith.constant 0 : i32
    %c0_i32_0 = arith.constant 0 : i32
    %c0_i32_1 = arith.constant 0 : i32
    return %arg0, %c0_i32, %c0_i32_0 : i32, i32, i32
  }
}

</mosaic_0001>

<bundles_post_ra>
// kernel: tpu_custom_call.1
= control target key start
LH: loop header
LB: loop body
LE: loop exit
PB: predicated region body
PF: predicated region fallthrough
CT: control target
= control target key end

     0   :  { %7 = vsyncpa [#allocation4], 0  ;;  %s1078_s0 = inlined_call_operand.hbm [shape: f32[2,5,16,16], index: 0, kind: input, shape index: {}]   ;;  %s1079_s1 = inlined_call_operand.hbm [shape: s8[2,16,16], index: 1, kind: input, shape index: {}]   ;;  %s1080_s2 = inlined_call_operand.hbm [shape: f32[2,8,16], index: 2, kind: output, shape index: {}]  }
   0x1   :  { %9 = vsyncpa [#allocation4 + $0x1], 0 }
   0x2   :  { %10 = vsyncpa [#allocation7], 0 }
   0x3   :  { %12 = vsyncpa [#allocation7 + $0x1], 0 }
   0x4   :  { %13 = vsyncpa [#allocation5], 0 }
   0x5   :  { %15 = vsyncpa [#allocation5 + $0x1], 0  ;;  %s804_s9 = smov 0   ;;  %s806_s10 = smov 0  }
   0x6   :  { %s808_s11 = smov 0   ;;  %s810_s12 = smov 0  }
   0x7   :  { %s812_s13 = smov 0   ;;  %s814_s14 = smov 0  }
   0x8 LB: > { %s528_s15 = sadd.s32 4294967295, %s776_s14   ;;  %s529_s16 = sadd.s32 4294967294, %s776_s14   ;;  %s776_s14 = sphi %s814_s14, %s21_s14   ;;  %s772_s13 = sphi %s812_s13, %s1098_s13   ;;  %s768_s12 = sphi %s810_s12, %s1097_s12   ;;  %s764_s11 = sphi %s808_s11, %s1096_s11   ;;  %s760_s10 = sphi %s806_s10, %s1095_s10   ;;  %s756_s9 = sphi %s804_s9, %s1094_s9  }
   0x9   : > { %s33_s17 = sadd.s32 1, %s772_s13  ;;  %s42_s18 = sadd.s32 1, %s764_s11 }
   0xa   : > { %p35_p0 = scmp.ge.s32.totalorder %s33_s17, 2  ;;  %p49_p1 = scmp.ne.s32.totalorder %s764_s11, %s760_s10 }
   0xb   : > { %p50_p2 = scmp.eq.s32.totalorder %s776_s14, 0  ;;  %p55_p3 = scmp.ne.s32.totalorder %s760_s10, %s756_s9 }
   0xc   : > { %s1100_s17 = smov (%p35_p0, %s33_s17), 0  ;;  %p56_p5 = scmp.eq.s32.totalorder %s528_s15, 0 }
   0xd   : > { %p845_p4 = por %p50_p2, %p49_p1  ;;  %s37_s20 = ssub.s32 %s772_s13, %s1100_s17 }
   0xe   : > { %p105_p6 = scmp.eq.s32.totalorder %s528_s15, 1  ;;  %p40_p7 = scmp.eq.s32.totalorder %s37_s20, 0 }
   0xf   : > { %p851_p8 = por %p56_p5, %p55_p3  ;;  %p111_p10 = scmp.eq.s32.totalorder %s529_s16, 1 }
  0x10   : > { %p855_p9 = por %p105_p6, %p49_p1  ;;  %p568_p13 = scmp.lt.s32.totalorder %s776_s14, 2 }
  0x11   : > { %s1084_s21 = scalar_select %p851_p8, 1, 0 }
  0x12   : > { %s1085_s22 = scalar_select %p855_p9, 1, 0 }
  0x13   : > { %s860_s23 = scalar_select %p40_p7, %s764_s11, %s42_s18  }
  0x14   : > { %p862_p11 = por %p111_p10, %p55_p3  ;;  %s869_s25 = sand.u32 1, %s764_s11  }
  0x15   : > { %s548_s26 = smul.u32 80, %s869_s25  ;;  %p875_p0 = pnand %p568_p13, %p845_p4 }
  0x16   : > { %s1086_s24 = scalar_select %p862_p11, 1, 0 }
  0x17   : > { %s549_s27 = smul.u32 1280, %s772_s13  ;;  %s135_s4 = scalar_lea.vmem [#allocation3], %s548_s26 }
  0x18   : > { %s144_s5 = sshll.u32 %s135_s4, 4  ;;  %s132_s6 = scalar_lea.sflag [#allocation4], %s869_s25  ;;  %s884_s5 = int_to_ptr.vmem [resolvable:$true] %s144_s5 }
  0x19   : > { %s882_s3 = scalar_lea.hbm %s1078_s0, %s549_s27  ;;  %p632_p3 = pneg %p875_p0 }
  0x1a   : > { %s630_s7 = scalar_lea.hbm %s882_s3, 1280  ;;  %s635_s16 = scalar_lea.hbm %s1078_s0, 2560 }
  0x1b   : > { %p631_p2 = scmp.ne.s32.totalorder %s882_s3, %s630_s7  ;;  %p636_p6 = scmp.lt.u32.totalorder %s882_s3, %s1078_s0 }
  0x1c   : > { %p637_p7 = scmp.lt.u32.totalorder %s635_s16, %s630_s7  ;;  %p639_p13 = scmp.lt.u32.totalorder %s630_s7, %s882_s3 }
  0x1d   : > { %p633_p4 = pnand %p632_p3, %p631_p2 }
  0x1e   : > { %p638_p10 = por %p637_p7, %p636_p6 }
  0x1f   : > { %p634_p5 = pneg %p633_p4 }
  0x20   : > { %p640_p12 = por %p639_p13, %p638_p10 }
  0x22   : > { %p641_p1 = pnand %p640_p12, %p634_p5 }
  0x24   : > { %644 = shalt.err (!%p641_p1)
}
  0x25   : > { %s645_s20 = scalar_lea.vmem %s884_s5, 1280  ;;  %s778_s26 = smov [#allocation3]  }
  0x26   : > { %p646_p2 = scmp.ne.s32.totalorder %s884_s5, %s645_s20  ;;  %s650_s27 = sshll.u32 %s778_s26, 4  ;;  %s651_s27 = int_to_ptr.vmem [resolvable:$false] %s650_s27 }
  0x27   : > { %s652_s29 = scalar_lea.vmem %s651_s27, 2560  ;;  %p653_p9 = scmp.lt.s32.totalorder %s884_s5, %s651_s27 }
  0x28   : > { %p648_p4 = pnand %p646_p2, %p632_p3  ;;  %p654_p6 = scmp.lt.s32.totalorder %s652_s29, %s645_s20 }
  0x2a   : > { %p649_p11 = pneg %p648_p4  ;;  %p655_p7 = por %p654_p6, %p653_p9 }
  0x2c   : > { %p656_p10 = pnand %p655_p7, %p649_p11 }
  0x2e   : > { %659 = shalt.err (!%p656_p10)
}
  0x2f   : > { %s779_s30 = smov 128   ;;  %s780_s4 = smov 8  }
  0x30   : > { %560 = dma.hbm_to_vmem [thread:$0]  (!%p875_p0), %s882_s3, 1280, %s884_s5, %s132_s6, %s779_s30, %s779_s30, %s780_s4  }
  0x31   : > { %p173_p12 = scmp.lt.s32.totalorder %s776_s14, 3  ;;  %s533_s7 = sshll.u32 %s869_s25, 2 }
  0x32   : > { %s543_s8 = sshll.u32 %s772_s13, 6  ;;  %p1088_p9 = scmp.ge.s32.totalorder %s776_s14, 1 }
  0x33   : > { %s927_s19 = scalar_lea.hbm %s1079_s1, %s543_s8  ;;  %s158_s20 = scalar_lea.vmem [#allocation6], %s533_s7 }
  0x34   : > { %p920_p11 = pnand %p1088_p9, %p173_p12  ;;  %s165_s26 = sshll.u32 %s158_s20, 4  ;;  %s929_s26 = int_to_ptr.vmem [resolvable:$true] %s165_s26 }
  0x35   : > { %s155_s3 = scalar_lea.sflag [#allocation7], %s869_s25  ;;  %s660_s5 = scalar_lea.hbm %s927_s19, 64 }
  0x36   : > { %p661_p1 = scmp.ne.s32.totalorder %s927_s19, %s660_s5  ;;  %s665_s29 = scalar_lea.hbm %s1079_s1, 128 }
  0x37   : > { %p666_p2 = scmp.lt.u32.totalorder %s927_s19, %s1079_s1  ;;  %p667_p4 = scmp.lt.u32.totalorder %s665_s29, %s660_s5 }
  0x38   : > { %p663_p5 = pnand %p661_p1, %p632_p3  ;;  %p669_p7 = scmp.lt.u32.totalorder %s660_s5, %s927_s19 }
  0x39   : > { %p668_p6 = por %p667_p4, %p666_p2 }
  0x3a   : > { %p664_p13 = pneg %p663_p5 }
  0x3b   : > { %p670_p10 = por %p669_p7, %p668_p6 }
  0x3d   : > { %p671_p12 = pnand %p670_p10, %p664_p13 }
  0x3f   : > { %674 = shalt.err (!%p671_p12)
}
  0x40   : > { %s675_s7 = scalar_lea.vmem %s929_s26, 64  ;;  %s781_s8 = smov [#allocation6]  }
  0x41   : > { %p676_p9 = scmp.ne.s32.totalorder %s929_s26, %s675_s7  ;;  %s680_s16 = sshll.u32 %s781_s8, 4  ;;  %s681_s16 = int_to_ptr.vmem [resolvable:$false] %s680_s16 }
  0x42   : > { %s682_s18 = scalar_lea.vmem %s681_s16, 128  ;;  %p683_p8 = scmp.lt.s32.totalorder %s929_s26, %s681_s16 }
  0x43   : > { %p678_p1 = pnand %p676_p9, %p632_p3  ;;  %p684_p2 = scmp.lt.s32.totalorder %s682_s18, %s675_s7 }
  0x45   : > { %p679_p5 = pneg %p678_p1  ;;  %p685_p4 = por %p684_p2, %p683_p8 }
  0x47   : > { %p686_p6 = pnand %p685_p4, %p679_p5 }
  0x49   : > { %689 = shalt.err (!%p686_p6)
}
  0x4a   : > { %s782_s20 = smov 32   ;;  %s783_s5 = smov 2  }
  0x4b   : > { %563 = dma.hbm_to_vmem [thread:$0]  (!%p875_p0), %s927_s19, 64, %s929_s26, %s155_s3, %s782_s20, %s782_s20, %s783_s5  }
  0x4c   : > { %177 = sbr.rel (%p920_p11) target bundleno = 522 (0x20a), region = 28  ;;  %s960_s6 = sand.u32 (!%p920_p11), 1, %s760_s10  }
  0x4d   : > { %s550_s27 = smul.u32 (!%p920_p11), 80, %s960_s6  ;;  %s180_s29 = scalar_lea.sflag (!%p920_p11), [#allocation4], %s960_s6 }
  0x4e   : > { %p1090_p8 = scmp.ne.s32.totalorder (!%p920_p11), %s1084_s21, 0 }
  0x4f   : > { %s964_s30 = scalar_lea.vmem (!%p920_p11), [#allocation3], %s550_s27 }
  0x53   : > { %743 = dma.done.wait (%p1090_p8), %s180_s29, 1280  }
  0x54   : > { %745 = vsyncadd (%p1090_p8), %s180_s29, 4294966016  ;;  %s537_s25 = sshll.u32 %s960_s6, 2  ;;  %s189_s28 = scalar_lea.sflag [#allocation7], %s960_s6 }
  0x55   : > { %s192_s15 = scalar_lea.vmem [#allocation6], %s537_s25 }
  0x56   : > { %747 = dma.done.wait (%p1090_p8), %s189_s28, 64  }
  0x57   : > { %749 = vsyncadd (%p1090_p8), %s189_s28, 4294967232  ;;  %v229_v0 = vlaneseq  ;;  %v545_v2 = vld [vmem:[%s192_s15] sm:$0xf]   ;;  %s784_s21 = smov 16   ;;  %vm261_vm4 = vcmask 1047680   ;;  %s785_s19 = smov 113  }
  0x58   : > { %v546_v4 = vunpack.c.0.s8 %v545_v2  ;;  %v547_v5 = vunpack.c.1.s8 %v545_v2  ;;  %s786_s26 = smov 127   ;;  %s538_s3 = sshll.u32 %s960_s6, 3  ;;  %vm351_vm5 = vcmask 130048   ;;  %v787_v42 = vmov 0.0  }
  0x59   : > { %v230_v1 = vshrl.u32 %v229_v0, 7  ;;  %s986_s4 = scalar_lea.vmem [#allocation8], %s538_s3  ;;  %v233_v44 = vand.u32 127, %v229_v0  ;;  %s540_s7 = sshll.u32 %s768_s12, 7 }
  0x5a   : > { %v227_v6 = vcvt.s32.f32 %v546_v4  ;;  %v228_v7 = vcvt.s32.f32 %v547_v5  ;;  %354 = vst.msk [vmem:[%s986_s4] sm:$0xff] %vm351_vm5, %v787_v42  ;;  %s424_s8 = sshll.u32 %s986_s4, 4  ;;  %s1027_s20 = scalar_lea.hbm %s1080_s2, %s540_s7  ;;  %s1029_s8 = int_to_ptr.vmem [resolvable:$true] %s424_s8 }
  0x5b   : > { %v231_v3 = vadd.s32 8, %v230_v1  ;;  %vm234_vm0 = vcmp.eq.s32.totalorder %v230_v1, 0  ;;  %vm238_vm1 = vcmp.lt.s32.totalorder %v230_v1, 1  ;;  %vm247_vm2 = vcmp.lt.s32.totalorder %v230_v1, 7  ;;  %s411_s5 = scalar_lea.sflag [#allocation5], %s960_s6  ;;  %s690_s27 = scalar_lea.vmem %s1029_s8, 128 }
  0x5c   : > { %v236_v8 = vrot.slane %v227_v6, 7  ;;  %v237_v9 = vrot.slane %v228_v7, 7  ;;  %v245_v10 = vrot.slane %v227_v6, 1  ;;  %v246_v11 = vrot.slane %v228_v7, 1  ;;  %p691_p0 = scmp.ne.s32.totalorder %s1029_s8, %s690_s27  ;;  %p1091_p3 = scmp.ne.s32.totalorder %s1085_s22, 0 }
  0x5d   : > { %vm244_vm3 = vcmp.eq.s32.totalorder %v231_v3, 15  ;;  %v252_v12 = vmul.f32 2.0, %v227_v6  ;;  %v253_v13 = vmul.f32 2.0, %v228_v7  ;;  %vm260_vm6 = vcmp.eq.s32.totalorder %v233_v44, 0  ;;  %s788_s12 = smov [#allocation8]  }
  0x5e   : > { %v240_v14 = vsel %vm238_vm1, %v237_v9, %v236_v8  ;;  %v248_v15 = vsel %vm247_vm2, %v245_v10, %v246_v11  ;;  %v249_v16 = vsel %vm247_vm2, %v246_v11, %v245_v10  ;;  %v239_v18 = vsel %vm238_vm1, %v236_v8, %v237_v9  ;;  %p692_p11 = pnand %p691_p0, %p1091_p3  ;;  %s694_s29 = sshll.u32 %s788_s12, 4  ;;  %s695_s29 = int_to_ptr.vmem [resolvable:$false] %s694_s29 }
  0x5f   : > { %v241_v17 = vsel %vm234_vm0, 0.0, %v240_v14  ;;  %v251_v19 = vsel %vm244_vm3, 0.0, %v249_v16  ;;  %v255_v22 = vadd.f32 %v253_v13, %v239_v18  ;;  %vm284_vm7 = vcmp.eq.s32.totalorder %v233_v44, 15  ;;  %p697_p7 = scmp.lt.s32.totalorder %s1029_s8, %s695_s29 }
  0x60   : > { %v258_v20 = vsub.f32 %v248_v15, %v241_v17  ;;  %v254_v21 = vadd.f32 %v252_v12, %v241_v17  ;;  %v259_v24 = vsub.f32 %v251_v19, %v239_v18  ;;  %p693_p13 = pneg %p692_p11 }
  0x61   : > { %v257_v25 = vadd.f32 %v255_v22, %v251_v19  ;;  %v361_v22 = vld [vmem:[%s964_s30 + $0x20] sm:$0xff] }
  0x62   : > { %293 = vrot.lane.b32.xlu0 %v258_v20, %s784_s21  ;;  %v256_v23 = vadd.f32 %v254_v21, %v248_v15  ;;  %v325_v47 = vmul.f32 2.0, %v258_v20  ;;  %v326_v54 = vmul.f32 2.0, %v259_v24  ;;  %v359_v21 = vld [vmem:[%s964_s30 + $0x10] sm:$0xff] }
  0x64   : > { %262 = vrot.lane.b32.xlu1 %v256_v23, %s784_s21 }
  0x66   : > { %296 = vrot.lane.b32.xlu0 %v259_v24, %s784_s21 }
  0x68   : > { %265 = vrot.lane.b32.xlu1 %v257_v25, %s784_s21 }
  0xd4   : > { %v294_v26 = vpop.permute.xlu0 %293 }
  0xd5   : > { %v295_v27 = vsel %vm261_vm4, %v294_v26, %v258_v20 }
  0xd6   : > { %299 = vrot.lane.b32.xlu0 %v295_v27, %s784_s21  ;;  %v263_v28 = vpop.permute.xlu1 %262 }
  0xd7   : > { %v264_v29 = vsel %vm261_vm4, %v263_v28, %v256_v23 }
  0xd8   : > { %v297_v30 = vpop.permute.xlu0 %296 }
  0xd9   : > { %v298_v31 = vsel %vm261_vm4, %v297_v30, %v259_v24  ;;  %v362_v30 = vld [vmem:[%s964_s30 + $0x28] sm:$0xff] }
  0xda   : > { %268 = vrot.lane.b32.xlu0 %v264_v29, %s784_s21  ;;  %301 = vrot.lane.b32.xlu1 %v298_v31, %s784_s21  ;;  %v266_v32 = vpop.permute.xlu1 %265  ;;  %v360_v29 = vld [vmem:[%s964_s30 + $0x18] sm:$0xff] }
  0xdb   : > { %v267_v33 = vsel %vm261_vm4, %v266_v32, %v257_v25  ;;  %v364_v31 = vld [vmem:[%s964_s30 + $0x38] sm:$0xff] }
  0xde   : > { %270 = vrot.lane.b32.xlu1 %v267_v33, %s784_s21 }
 0x148   : > { %v300_v34 = vpop.permute.xlu0 %299 }
 0x149   : > { %v303_v35 = vsel %vm261_vm4, %v300_v34, %v258_v20  ;;  %v357_v20 = vld [vmem:[%s964_s30] sm:$0xff] }
 0x14a   : > { %307 = vrot.lane.b32.xlu0 %v303_v35, %s785_s19 }
 0x14c   : > { %v269_v36 = vpop.permute.xlu0 %268  ;;  %v302_v37 = vpop.permute.xlu1 %301 }
 0x14d   : > { %v272_v38 = vsel %vm261_vm4, %v269_v36, %v256_v23  ;;  %v304_v39 = vsel %vm261_vm4, %v302_v37, %v259_v24  ;;  %v363_v24 = vld [vmem:[%s964_s30 + $0x30] sm:$0xff]  ;;  %v365_v36 = vld [vmem:[%s964_s30 + $0x40] sm:$0xff] }
 0x14e   : > { %276 = vrot.lane.b32.xlu0 %v272_v38, %s785_s19  ;;  %309 = vrot.lane.b32.xlu1 %v304_v39, %s785_s19 }
 0x150   : > { %v271_v40 = vpop.permute.xlu1 %270 }
 0x151   : > { %v273_v41 = vsel %vm261_vm4, %v271_v40, %v257_v25  ;;  %v358_v25 = vld [vmem:[%s964_s30 + $0x8] sm:$0xff] }
 0x152   : > { %285 = vrot.lane.b32.xlu0 %v272_v38, %s786_s26  ;;  %278 = vrot.lane.b32.xlu1 %v273_v41, %s785_s19  ;;  %v366_v38 = vld [vmem:[%s964_s30 + $0x48] sm:$0xff]  ;;  %s696_s30 = scalar_lea.vmem %s695_s29, 256 }
 0x153   : > { %p698_p10 = scmp.lt.s32.totalorder %s696_s30, %s690_s27 }
 0x155   : > { %p699_p12 = por %p698_p10, %p697_p7 }
 0x156   : > { %315 = vrot.lane.b32.xlu0 %v303_v35, %s786_s26  ;;  %287 = vrot.lane.b32.xlu1 %v273_v41, %s786_s26 }
 0x157   : > { %p700_p9 = pnand %p699_p12, %p693_p13 }
 0x15a   : > { %317 = vrot.lane.b32.xlu1 %v304_v39, %s786_s26 }
 0x1bc   : > { %v308_v43 = vpop.permute.xlu0 %307 }
 0x1bd   : > { %v313_v50 = vsel %vm260_vm6, 0.0, %v308_v43 }
 0x1be   : > { %v327_v53 = vadd.f32 %v325_v47, %v313_v50 }
 0x1c0   : > { %v277_v45 = vpop.permute.xlu0 %276  ;;  %v310_v46 = vpop.permute.xlu1 %309 }
 0x1c1   : > { %v282_v52 = vsel %vm260_vm6, 0.0, %v277_v45  ;;  %v314_v58 = vsel %vm260_vm6, 0.0, %v310_v46 }
 0x1c2   : > { %v328_v62 = vadd.f32 %v326_v54, %v314_v58 }
 0x1c4   : > { %v286_v48 = vpop.permute.xlu0 %285  ;;  %v279_v49 = vpop.permute.xlu1 %278 }
 0x1c5   : > { %v291_v51 = vsel %vm284_vm7, 0.0, %v286_v48  ;;  %v283_v0 = vsel %vm260_vm6, 0.0, %v279_v49 }
 0x1c6   : > { %v323_v55 = vsub.f32 %v291_v51, %v282_v52 }
 0x1c8   : > { %v316_v56 = vpop.permute.xlu0 %315  ;;  %v288_v57 = vpop.permute.xlu1 %287  ;;  %v331_v63 = vmul.f32 %v323_v55, %v323_v55 }
 0x1c9   : > { %v321_v59 = vsel %vm284_vm7, 0.0, %v316_v56  ;;  %v292_v61 = vsel %vm284_vm7, 0.0, %v288_v57 }
 0x1ca   : > { %v329_v60 = vadd.f32 %v327_v53, %v321_v59  ;;  %v324_v3 = vsub.f32 %v292_v61, %v283_v0 }
 0x1cc   : > { %v333_v1 = vmul.f32 %v329_v60, %v329_v60  ;;  %v318_v2 = vpop.permute.xlu1 %317  ;;  %v332_v7 = vmul.f32 %v324_v3, %v324_v3 }
 0x1cd   : > { %v322_v4 = vsel %vm284_vm7, 0.0, %v318_v2 }
 0x1ce   : > { %v335_v5 = vadd.f32 %v333_v1, %v331_v63  ;;  %v330_v6 = vadd.f32 %v328_v62, %v322_v4 }
 0x1d0   : > { %626 = vrsqrt.f32 %v335_v5  ;;  %v334_v8 = vmul.f32 %v330_v6, %v330_v6  ;;  %vm339_vm8 = vcmp.eq.f32.partialorder %v335_v5, inf  ;;  %v342_v12 = vand.u32 2147483648, %v335_v5  ;;  %v407_v6 = vld [vmem:[%s986_s4] sm:$0xff] }
 0x1d1   : > { %vm341_vm9 = vcmp.eq.f32.partialorder %v335_v5, 0.0 }
 0x1d2   : > { %v336_v9 = vadd.f32 %v334_v8, %v332_v7 }
 0x1d4   : > { %628 = vrsqrt.f32 %v336_v9  ;;  %vm346_vm10 = vcmp.eq.f32.partialorder %v336_v9, inf  ;;  %v349_v17 = vand.u32 2147483648, %v336_v9  ;;  %vm348_vm11 = vcmp.eq.f32.partialorder %v336_v9, 0.0 }
 0x1da   : > { %v627_v10 = vpop.eup %626 }
 0x1db   : > { %v338_v11 = vmul.f32 %v627_v10, %v335_v5 }
 0x1dd   : > { %v340_v13 = vsel %vm339_vm8, %v335_v5, %v338_v11 }
 0x1de   : > { %v343_v14 = vsel %vm341_vm9, %v342_v12, %v340_v13  ;;  %v629_v15 = vpop.eup %628 }
 0x1df   : > { %352 = vst.msk [vmem:[#allocation2] sm:$0xff] %vm351_vm5, %v343_v14  ;;  %v345_v16 = vmul.f32 %v629_v15, %v336_v9 }
 0x1e1   : > { %v347_v18 = vsel %vm346_vm10, %v336_v9, %v345_v16 }
 0x1e2   : > { %v350_v19 = vsel %vm348_vm11, %v349_v17, %v347_v18 }
 0x1e3   : > { %353 = vst.msk [vmem:[#allocation2 + $0x8] sm:$0xff] %vm351_vm5, %v350_v19 }
 0x1e6   : > { %v355_v23 = vld [vmem:[#allocation2] sm:$0xff] }
 0x1e7   : > { %v367_v26 = vsub.f32 %v357_v20, %v355_v23  ;;  %v369_v27 = vsub.f32 %v359_v21, %v355_v23  ;;  %v371_v28 = vsub.f32 %v361_v22, %v355_v23  ;;  %v373_v32 = vsub.f32 %v363_v24, %v355_v23 }
 0x1e8   : > { %v375_v45 = vsub.f32 %v365_v36, %v355_v23 }
 0x1e9   : > { %v377_v33 = vand.u32 2147483647, %v367_v26  ;;  %v379_v34 = vand.u32 2147483647, %v369_v27  ;;  %v381_v35 = vand.u32 2147483647, %v371_v28 }
 0x1ea   : > { %v356_v37 = vld [vmem:[#allocation2 + $0x8] sm:$0xff]  ;;  %v383_v46 = vand.u32 2147483647, %v373_v32  ;;  %v385_v58 = vand.u32 2147483647, %v375_v45 }
 0x1eb   : > { %v388_v39 = vsel %vm351_vm5, %v377_v33, 0.0  ;;  %v389_v40 = vsel %vm351_vm5, %v379_v34, 0.0  ;;  %v368_v41 = vsub.f32 %v358_v25, %v356_v37  ;;  %v370_v42 = vsub.f32 %v360_v29, %v356_v37 }
 0x1ec   : > { %v372_v43 = vsub.f32 %v362_v30, %v356_v37  ;;  %v374_v44 = vsub.f32 %v364_v31, %v356_v37  ;;  %v390_v47 = vadd.f32 %v389_v40, %v388_v39  ;;  %v391_v48 = vsel %vm351_vm5, %v381_v35, 0.0 }
 0x1ed   : > { %v376_v49 = vsub.f32 %v366_v38, %v356_v37  ;;  %v378_v50 = vand.u32 2147483647, %v368_v41  ;;  %v380_v51 = vand.u32 2147483647, %v370_v42  ;;  %v393_v60 = vsel %vm351_vm5, %v383_v46, 0.0 }
 0x1ee   : > { %v382_v52 = vand.u32 2147483647, %v372_v43  ;;  %v392_v53 = vadd.f32 %v391_v48, %v390_v47  ;;  %v384_v54 = vand.u32 2147483647, %v374_v44  ;;  %v395_v2 = vsel %vm351_vm5, %v385_v58, 0.0 }
 0x1ef   : > { %v397_v55 = vsel %vm351_vm5, %v378_v50, 0.0  ;;  %v398_v56 = vsel %vm351_vm5, %v380_v51, 0.0  ;;  %v386_v59 = vand.u32 2147483647, %v376_v49 }
 0x1f0   : > { %v399_v57 = vadd.f32 %v398_v56, %v397_v55  ;;  %v400_v61 = vsel %vm351_vm5, %v382_v52, 0.0  ;;  %v394_v62 = vadd.f32 %v393_v60, %v392_v53  ;;  %v402_v0 = vsel %vm351_vm5, %v384_v54, 0.0 }
 0x1f1   : > { %v404_v3 = vsel %vm351_vm5, %v386_v59, 0.0 }
 0x1f2   : > { %v401_v63 = vadd.f32 %v400_v61, %v399_v57  ;;  %v396_v4 = vadd.f32 %v395_v2, %v394_v62 }
 0x1f4   : > { %v403_v1 = vadd.f32 %v402_v0, %v401_v63 }
 0x1f6   : > { %v405_v5 = vadd.f32 %v404_v3, %v403_v1 }
 0x1f8   : > { %v406_v7 = vadd.f32 %v405_v5, %v396_v4 }
 0x1fa   : > { %v408_v8 = vadd.f32 %v407_v6, %v406_v7 }
 0x1fc   : > { %409 = vst.msk [vmem:[%s986_s4] sm:$0xff] %vm351_vm5, %v408_v8 }
 0x1fd   : > { %703 = shalt.err (!%p700_p9)
}
 0x1fe   : > { %s704_s6 = scalar_lea.hbm %s1027_s20, 128  ;;  %s708_s15 = scalar_lea.hbm %s1080_s2, 256 }
 0x1ff   : > { %p705_p1 = scmp.ne.s32.totalorder %s1027_s20, %s704_s6  ;;  %p709_p4 = scmp.lt.u32.totalorder %s1027_s20, %s1080_s2 }
 0x200   : > { %p710_p6 = scmp.lt.u32.totalorder %s708_s15, %s704_s6  ;;  %p712_p0 = scmp.lt.u32.totalorder %s704_s6, %s1027_s20 }
 0x201   : > { %p706_p5 = pnand %p705_p1, %p1091_p3 }
 0x202   : > { %p711_p8 = por %p710_p6, %p709_p4 }
 0x203   : > { %p707_p2 = pneg %p706_p5 }
 0x204   : > { %p713_p11 = por %p712_p0, %p711_p8 }
 0x206   : > { %p714_p13 = pnand %p713_p11, %p707_p2 }
 0x208   : > { %717 = shalt.err (!%p714_p13)
}
 0x209   : > { %555 = dma.vmem_to_hbm [thread:$0]  (%p1091_p3), %s1029_s8, 128, %s1027_s20, %s411_s5  }
 0x20a PF: > { %s436_s26 = sand.u32 1, %s756_s9   ;;  %p1092_p7 = scmp.ne.s32.totalorder %s1086_s24, 0 }
 0x20b   : > { %p1093_p10 = scmp.ge.s32.totalorder %s776_s14, 2  ;;  %s437_s3 = scalar_lea.sflag [#allocation5], %s436_s26 }
 0x20d   : > { %p565_p12 = pnand %p1093_p10, %p1092_p7 }
 0x20f   : > { %751 = dma.done.wait (!%p565_p12), %s437_s3, 128  }
 0x210   : > { %753 = vsyncadd (!%p565_p12), %s437_s3, 4294967168  ;;  %s21_s14 = sadd.s32 1, %s776_s14   ;;  %s1094_s9 = smov %s760_s10 }
 0x211   : > { %p18_p9 = scmp.ge.s32.totalorder %s21_s14, 4   ;;  %s1095_s10 = smov %s764_s11 }
 0x212   : > { %s1096_s11 = smov %s860_s23  ;;  %s1097_s12 = smov %s772_s13 }
 0x213   : > { %s1098_s13 = smov %s1100_s17  ;;  %20 = sbr.rel (!%p18_p9) target bundleno = 8 (0x8), region = 90 }
 0x21a   :  { %442 = vsyncpa [#allocation4], 1 }
 0x21b   :  { %444 = vsyncpa [#allocation4 + $0x1], 1 }
 0x21c   :  { %445 = vsyncpa [#allocation7], 1 }
 0x21d   :  { %447 = vsyncpa [#allocation7 + $0x1], 1 }
 0x21e   :  { %448 = vsyncpa [#allocation5], 1 }
 0x21f   :  { %450 = vsyncpa [#allocation5 + $0x1], 1 }

</bundles_post_ra>
